<compile_context>
chip_gen: v6e
topology: v6e:2x2x1
jax: 0.10.0
libtpu: 0.0.40
codegen_flags: <defaults>
</compile_context>

<pallas_src>
import jax
import jax.numpy as jnp
from jax.experimental import pallas as pl
from jax.experimental.pallas import tpu as pltpu

_LANE = 128
_SUBLANE = 8


def _round_up(x, m):
    return ((x + m - 1) // m) * m


def cbow_kernel(idx_ref, emb_ref, wt_ref, b_ref, out_ref, summed_ref):
    """One grid step = one vocab tile of the output.

    idx_ref    : SMEM (Bp, C) int32   -- scalar-prefetched context indices
    emb_ref    : VMEM (Vr, Dp)        -- full embedding table (resident)
    wt_ref     : VMEM (Dp, TN)        -- streamed tile of W^T
    b_ref      : VMEM (1, TN) f32     -- streamed bias tile
    out_ref    : VMEM (Bp, TN) f32    -- output tile
    summed_ref : VMEM (Bp, Dp) f32    -- scratch: sum_c embedding[x[b, c]]
    """
    Bp, C = idx_ref.shape

    # Gather + context-sum (tiny: B*C dynamic row loads, f32 accumulation).
    # Recomputed per vocab tile so grid points stay independent ("parallel").
    for b in range(Bp):
        acc = emb_ref[pl.ds(idx_ref[b, 0], 1), :].astype(jnp.float32)
        for c in range(1, C):
            acc = acc + emb_ref[pl.ds(idx_ref[b, c], 1), :].astype(jnp.float32)
        summed_ref[pl.ds(b, 1), :] = acc

    # Linear layer for this vocab tile: (Bp, Dp) @ (Dp, TN) on the MXU,
    # f32 accumulation; bias added once per tile. No transpose in-kernel.
    lhs = summed_ref[...].astype(wt_ref.dtype)   # bf16 MXU path if params bf16
    out_ref[...] = (
        jnp.dot(lhs, wt_ref[...], preferred_element_type=jnp.float32)
        + b_ref[...]
    )


def cbow_forward(idx, embedding_matrix, linear_w, linear_b,
                 *, param_dtype=jnp.float32):
    """idx: (B, C) int32; embedding_matrix: (V, D); linear_w: (V, D) PyTorch
    (out, in) convention; linear_b: (V,). Returns (B, V) f32 logits."""
    B, C = idx.shape
    V, D = embedding_matrix.shape
    assert linear_w.shape == (V, D) and linear_b.shape == (V,)

    # Padded / tiled shapes.
    Bp = max(_SUBLANE, _round_up(B, _SUBLANE))      # sublane-full batch
    Dp = _round_up(D, _LANE)                        # lane-dense K dim
    Vr = _round_up(V, _SUBLANE)                     # embedding rows
    TN = min(512, _round_up(V, _LANE))              # vocab tile (lane-dense)
    Vp = _round_up(V, TN)                           # padded vocab
    grid = (Vp // TN,)

    # Zero-padded operands; padded output rows/cols are sliced away below
    # (padded idx rows gather embedding row 0 -> harmless, discarded).
    idx_p = jnp.zeros((Bp, C), jnp.int32).at[:B].set(idx.astype(jnp.int32))
    emb_p = jnp.zeros((Vr, Dp), param_dtype).at[:V, :D].set(
        embedding_matrix.astype(param_dtype))
    wt_p = jnp.zeros((Dp, Vp), param_dtype).at[:D, :V].set(
        linear_w.astype(param_dtype).T)             # pre-transposed: (D, V)
    bias_p = jnp.zeros((1, Vp), jnp.float32).at[0, :V].set(
        linear_b.astype(jnp.float32))

    # Explicit VMEM budget: resident embedding + double-buffered W/bias/out
    # tiles + summed scratch (sized to fit v7x's 64 MiB VMEM).
    itm = jnp.dtype(param_dtype).itemsize
    vmem_need = (
        2 * Vr * Dp * itm        # embedding (worst case: both pipeline bufs)
        + 2 * Dp * TN * itm      # W^T tile, double-buffered
        + 2 * TN * 4             # bias tile
        + 2 * Bp * TN * 4        # output tile, double-buffered
        + Bp * Dp * 4            # summed scratch
    )
    vmem_limit = min(max(2 * int(vmem_need), 16 << 20), 100 << 20)

    out_p = pl.pallas_call(
        cbow_kernel,
        out_shape=jax.ShapeDtypeStruct((Bp, Vp), jnp.float32),
        grid_spec=pltpu.PrefetchScalarGridSpec(
            num_scalar_prefetch=1,                      # idx_p -> SMEM
            grid=grid,
            in_specs=[
                pl.BlockSpec((Vr, Dp), lambda j, idx_sm: (0, 0)),   # embedding
                pl.BlockSpec((Dp, TN), lambda j, idx_sm: (0, j)),   # W^T tile
                pl.BlockSpec((1, TN), lambda j, idx_sm: (0, j)),    # bias tile
            ],
            out_specs=pl.BlockSpec((Bp, TN), lambda j, idx_sm: (0, j)),
            scratch_shapes=[pltpu.VMEM((Bp, Dp), jnp.float32)],
        ),
        compiler_params=pltpu.CompilerParams(
            dimension_semantics=("parallel",),
            vmem_limit_bytes=vmem_limit,
        ),
    )(idx_p, emb_p, wt_p, bias_p)

    return out_p[:B, :V]


def cbow_reference(idx, embedding_matrix, linear_w, linear_b):
    embedded = embedding_matrix[idx]                  # (B, C, D)
    summed = jnp.sum(embedded, axis=1)                # (B, D)
    return summed @ linear_w.T + linear_b             # (B, V)


if __name__ == "__main__":
    vocab_size = 20
    embedding_dim = 10
    batch = 2
    context = 4

    key = jax.random.PRNGKey(0)
    k_idx, k_emb, k_w, k_b = jax.random.split(key, 4)

    # Deterministic synthetic parameters mirroring the module's shapes.
    embedding_matrix = jax.random.normal(
        k_emb, (vocab_size, embedding_dim), dtype=jnp.float32)
    linear_w = jax.random.normal(
        k_w, (vocab_size, embedding_dim), dtype=jnp.float32) * 0.1
    linear_b = jax.random.normal(k_b, (vocab_size,), dtype=jnp.float32) * 0.1

    # Example input: context-word indices.
    x = jax.random.randint(k_idx, (batch, context), 0, vocab_size,
                           dtype=jnp.int32)

    # f32 params keep the exact nn.Module numerics; pass
    # param_dtype=jnp.bfloat16 for the bf16 MXU / half-HBM path on v6e/v7x.
    out = cbow_forward(x, embedding_matrix, linear_w, linear_b)
    out = jax.block_until_ready(out)

    ref = cbow_reference(x, embedding_matrix, linear_w, linear_b)
    assert out.shape == (batch, vocab_size)
    assert jnp.allclose(out, ref, atol=1e-4, rtol=1e-4), \
        float(jnp.max(jnp.abs(out - ref)))

    print("KERNEL_OK")
</pallas_src>

<mosaic_0001>
module attributes {stable_mosaic.version = 11 : i64} {
  func.func @cbow_kernel(%arg0: i32, %arg1: memref<8x4xi32, #tpu.memory_space<smem>>, %arg2: memref<24x128xf32, #tpu.memory_space<vmem>>, %arg3: memref<128x128xf32, #tpu.memory_space<vmem>>, %arg4: memref<1x128xf32, #tpu.memory_space<vmem>>, %arg5: memref<8x128xf32, #tpu.memory_space<vmem>>, %arg6: memref<8x128xf32, #tpu.memory_space<vmem>>) attributes {dimension_semantics = [#tpu.dimension_semantics<parallel>], iteration_bounds = array<i64: 1>, scalar_prefetch = 1 : i64, scratch_operands = 1 : i64, tpu.core_type = #tpu.core_type<tc>, window_params = [{pipeline_mode = #tpu.pipeline_mode<synchronous>, transform_indices = @transform_0, window_bounds = array<i64: 24, 128>}, {transform_indices = @transform_1, window_bounds = array<i64: 128, 128>}, {transform_indices = @transform_2, window_bounds = array<i64: 1, 128>}, {transform_indices = @transform_3, window_bounds = array<i64: 8, 128>}]} {
    %c0 = arith.constant 0 : index
    %c0_0 = arith.constant 0 : index
    %0 = memref.load %arg1[%c0, %c0_0] : memref<8x4xi32, #tpu.memory_space<smem>>
    %1 = arith.index_cast %0 : i32 to index
    %c0_1 = arith.constant 0 : index
    %2 = vector.load %arg2[%1, %c0_1] : memref<24x128xf32, #tpu.memory_space<vmem>>, vector<1x128xf32>
    %c0_2 = arith.constant 0 : index
    %c1 = arith.constant 1 : index
    %3 = memref.load %arg1[%c0_2, %c1] : memref<8x4xi32, #tpu.memory_space<smem>>
    %4 = arith.index_cast %3 : i32 to index
    %c0_3 = arith.constant 0 : index
    %5 = vector.load %arg2[%4, %c0_3] : memref<24x128xf32, #tpu.memory_space<vmem>>, vector<1x128xf32>
    %6 = arith.addf %2, %5 : vector<1x128xf32>
    %c0_4 = arith.constant 0 : index
    %c2 = arith.constant 2 : index
    %7 = memref.load %arg1[%c0_4, %c2] : memref<8x4xi32, #tpu.memory_space<smem>>
    %8 = arith.index_cast %7 : i32 to index
    %c0_5 = arith.constant 0 : index
    %9 = vector.load %arg2[%8, %c0_5] : memref<24x128xf32, #tpu.memory_space<vmem>>, vector<1x128xf32>
    %10 = arith.addf %6, %9 : vector<1x128xf32>
    %c0_6 = arith.constant 0 : index
    %c3 = arith.constant 3 : index
    %11 = memref.load %arg1[%c0_6, %c3] : memref<8x4xi32, #tpu.memory_space<smem>>
    %12 = arith.index_cast %11 : i32 to index
    %c0_7 = arith.constant 0 : index
    %13 = vector.load %arg2[%12, %c0_7] : memref<24x128xf32, #tpu.memory_space<vmem>>, vector<1x128xf32>
    %14 = arith.addf %10, %13 : vector<1x128xf32>
    %c0_8 = arith.constant 0 : index
    %c0_9 = arith.constant 0 : index
    %15 = vector.load %arg6[%c0_8, %c0_9] : memref<8x128xf32, #tpu.memory_space<vmem>>, vector<1x128xf32>
    tpu.vector_store %arg6[%c0_8, %c0_9], %14 {strides = array<i32>} : memref<8x128xf32, #tpu.memory_space<vmem>>, vector<1x128xf32>,
    %c1_10 = arith.constant 1 : index
    %c0_11 = arith.constant 0 : index
    %16 = memref.load %arg1[%c1_10, %c0_11] : memref<8x4xi32, #tpu.memory_space<smem>>
    %17 = arith.index_cast %16 : i32 to index
    %c0_12 = arith.constant 0 : index
    %18 = vector.load %arg2[%17, %c0_12] : memref<24x128xf32, #tpu.memory_space<vmem>>, vector<1x128xf32>
    %c1_13 = arith.constant 1 : index
    %c1_14 = arith.constant 1 : index
    %19 = memref.load %arg1[%c1_13, %c1_14] : memref<8x4xi32, #tpu.memory_space<smem>>
    %20 = arith.index_cast %19 : i32 to index
    %c0_15 = arith.constant 0 : index
    %21 = vector.load %arg2[%20, %c0_15] : memref<24x128xf32, #tpu.memory_space<vmem>>, vector<1x128xf32>
    %22 = arith.addf %18, %21 : vector<1x128xf32>
    %c1_16 = arith.constant 1 : index
    %c2_17 = arith.constant 2 : index
    %23 = memref.load %arg1[%c1_16, %c2_17] : memref<8x4xi32, #tpu.memory_space<smem>>
    %24 = arith.index_cast %23 : i32 to index
    %c0_18 = arith.constant 0 : index
    %25 = vector.load %arg2[%24, %c0_18] : memref<24x128xf32, #tpu.memory_space<vmem>>, vector<1x128xf32>
    %26 = arith.addf %22, %25 : vector<1x128xf32>
    %c1_19 = arith.constant 1 : index
    %c3_20 = arith.constant 3 : index
    %27 = memref.load %arg1[%c1_19, %c3_20] : memref<8x4xi32, #tpu.memory_space<smem>>
    %28 = arith.index_cast %27 : i32 to index
    %c0_21 = arith.constant 0 : index
    %29 = vector.load %arg2[%28, %c0_21] : memref<24x128xf32, #tpu.memory_space<vmem>>, vector<1x128xf32>
    %30 = arith.addf %26, %29 : vector<1x128xf32>
    %c1_22 = arith.constant 1 : index
    %c0_23 = arith.constant 0 : index
    %31 = vector.load %arg6[%c1_22, %c0_23] : memref<8x128xf32, #tpu.memory_space<vmem>>, vector<1x128xf32>
    tpu.vector_store %arg6[%c1_22, %c0_23], %30 {strides = array<i32>} : memref<8x128xf32, #tpu.memory_space<vmem>>, vector<1x128xf32>,
    %c2_24 = arith.constant 2 : index
    %c0_25 = arith.constant 0 : index
    %32 = memref.load %arg1[%c2_24, %c0_25] : memref<8x4xi32, #tpu.memory_space<smem>>
    %33 = arith.index_cast %32 : i32 to index
    %c0_26 = arith.constant 0 : index
    %34 = vector.load %arg2[%33, %c0_26] : memref<24x128xf32, #tpu.memory_space<vmem>>, vector<1x128xf32>
    %c2_27 = arith.constant 2 : index
    %c1_28 = arith.constant 1 : index
    %35 = memref.load %arg1[%c2_27, %c1_28] : memref<8x4xi32, #tpu.memory_space<smem>>
    %36 = arith.index_cast %35 : i32 to index
    %c0_29 = arith.constant 0 : index
    %37 = vector.load %arg2[%36, %c0_29] : memref<24x128xf32, #tpu.memory_space<vmem>>, vector<1x128xf32>
    %38 = arith.addf %34, %37 : vector<1x128xf32>
    %c2_30 = arith.constant 2 : index
    %c2_31 = arith.constant 2 : index
    %39 = memref.load %arg1[%c2_30, %c2_31] : memref<8x4xi32, #tpu.memory_space<smem>>
    %40 = arith.index_cast %39 : i32 to index
    %c0_32 = arith.constant 0 : index
    %41 = vector.load %arg2[%40, %c0_32] : memref<24x128xf32, #tpu.memory_space<vmem>>, vector<1x128xf32>
    %42 = arith.addf %38, %41 : vector<1x128xf32>
    %c2_33 = arith.constant 2 : index
    %c3_34 = arith.constant 3 : index
    %43 = memref.load %arg1[%c2_33, %c3_34] : memref<8x4xi32, #tpu.memory_space<smem>>
    %44 = arith.index_cast %43 : i32 to index
    %c0_35 = arith.constant 0 : index
    %45 = vector.load %arg2[%44, %c0_35] : memref<24x128xf32, #tpu.memory_space<vmem>>, vector<1x128xf32>
    %46 = arith.addf %42, %45 : vector<1x128xf32>
    %c2_36 = arith.constant 2 : index
    %c0_37 = arith.constant 0 : index
    %47 = vector.load %arg6[%c2_36, %c0_37] : memref<8x128xf32, #tpu.memory_space<vmem>>, vector<1x128xf32>
    tpu.vector_store %arg6[%c2_36, %c0_37], %46 {strides = array<i32>} : memref<8x128xf32, #tpu.memory_space<vmem>>, vector<1x128xf32>,
    %c3_38 = arith.constant 3 : index
    %c0_39 = arith.constant 0 : index
    %48 = memref.load %arg1[%c3_38, %c0_39] : memref<8x4xi32, #tpu.memory_space<smem>>
    %49 = arith.index_cast %48 : i32 to index
    %c0_40 = arith.constant 0 : index
    %50 = vector.load %arg2[%49, %c0_40] : memref<24x128xf32, #tpu.memory_space<vmem>>, vector<1x128xf32>
    %c3_41 = arith.constant 3 : index
    %c1_42 = arith.constant 1 : index
    %51 = memref.load %arg1[%c3_41, %c1_42] : memref<8x4xi32, #tpu.memory_space<smem>>
    %52 = arith.index_cast %51 : i32 to index
    %c0_43 = arith.constant 0 : index
    %53 = vector.load %arg2[%52, %c0_43] : memref<24x128xf32, #tpu.memory_space<vmem>>, vector<1x128xf32>
    %54 = arith.addf %50, %53 : vector<1x128xf32>
    %c3_44 = arith.constant 3 : index
    %c2_45 = arith.constant 2 : index
    %55 = memref.load %arg1[%c3_44, %c2_45] : memref<8x4xi32, #tpu.memory_space<smem>>
    %56 = arith.index_cast %55 : i32 to index
    %c0_46 = arith.constant 0 : index
    %57 = vector.load %arg2[%56, %c0_46] : memref<24x128xf32, #tpu.memory_space<vmem>>, vector<1x128xf32>
    %58 = arith.addf %54, %57 : vector<1x128xf32>
    %c3_47 = arith.constant 3 : index
    %c3_48 = arith.constant 3 : index
    %59 = memref.load %arg1[%c3_47, %c3_48] : memref<8x4xi32, #tpu.memory_space<smem>>
    %60 = arith.index_cast %59 : i32 to index
    %c0_49 = arith.constant 0 : index
    %61 = vector.load %arg2[%60, %c0_49] : memref<24x128xf32, #tpu.memory_space<vmem>>, vector<1x128xf32>
    %62 = arith.addf %58, %61 : vector<1x128xf32>
    %c3_50 = arith.constant 3 : index
    %c0_51 = arith.constant 0 : index
    %63 = vector.load %arg6[%c3_50, %c0_51] : memref<8x128xf32, #tpu.memory_space<vmem>>, vector<1x128xf32>
    tpu.vector_store %arg6[%c3_50, %c0_51], %62 {strides = array<i32>} : memref<8x128xf32, #tpu.memory_space<vmem>>, vector<1x128xf32>,
    %c4 = arith.constant 4 : index
    %c0_52 = arith.constant 0 : index
    %64 = memref.load %arg1[%c4, %c0_52] : memref<8x4xi32, #tpu.memory_space<smem>>
    %65 = arith.index_cast %64 : i32 to index
    %c0_53 = arith.constant 0 : index
    %66 = vector.load %arg2[%65, %c0_53] : memref<24x128xf32, #tpu.memory_space<vmem>>, vector<1x128xf32>
    %c4_54 = arith.constant 4 : index
    %c1_55 = arith.constant 1 : index
    %67 = memref.load %arg1[%c4_54, %c1_55] : memref<8x4xi32, #tpu.memory_space<smem>>
    %68 = arith.index_cast %67 : i32 to index
    %c0_56 = arith.constant 0 : index
    %69 = vector.load %arg2[%68, %c0_56] : memref<24x128xf32, #tpu.memory_space<vmem>>, vector<1x128xf32>
    %70 = arith.addf %66, %69 : vector<1x128xf32>
    %c4_57 = arith.constant 4 : index
    %c2_58 = arith.constant 2 : index
    %71 = memref.load %arg1[%c4_57, %c2_58] : memref<8x4xi32, #tpu.memory_space<smem>>
    %72 = arith.index_cast %71 : i32 to index
    %c0_59 = arith.constant 0 : index
    %73 = vector.load %arg2[%72, %c0_59] : memref<24x128xf32, #tpu.memory_space<vmem>>, vector<1x128xf32>
    %74 = arith.addf %70, %73 : vector<1x128xf32>
    %c4_60 = arith.constant 4 : index
    %c3_61 = arith.constant 3 : index
    %75 = memref.load %arg1[%c4_60, %c3_61] : memref<8x4xi32, #tpu.memory_space<smem>>
    %76 = arith.index_cast %75 : i32 to index
    %c0_62 = arith.constant 0 : index
    %77 = vector.load %arg2[%76, %c0_62] : memref<24x128xf32, #tpu.memory_space<vmem>>, vector<1x128xf32>
    %78 = arith.addf %74, %77 : vector<1x128xf32>
    %c4_63 = arith.constant 4 : index
    %c0_64 = arith.constant 0 : index
    %79 = vector.load %arg6[%c4_63, %c0_64] : memref<8x128xf32, #tpu.memory_space<vmem>>, vector<1x128xf32>
    tpu.vector_store %arg6[%c4_63, %c0_64], %78 {strides = array<i32>} : memref<8x128xf32, #tpu.memory_space<vmem>>, vector<1x128xf32>,
    %c5 = arith.constant 5 : index
    %c0_65 = arith.constant 0 : index
    %80 = memref.load %arg1[%c5, %c0_65] : memref<8x4xi32, #tpu.memory_space<smem>>
    %81 = arith.index_cast %80 : i32 to index
    %c0_66 = arith.constant 0 : index
    %82 = vector.load %arg2[%81, %c0_66] : memref<24x128xf32, #tpu.memory_space<vmem>>, vector<1x128xf32>
    %c5_67 = arith.constant 5 : index
    %c1_68 = arith.constant 1 : index
    %83 = memref.load %arg1[%c5_67, %c1_68] : memref<8x4xi32, #tpu.memory_space<smem>>
    %84 = arith.index_cast %83 : i32 to index
    %c0_69 = arith.constant 0 : index
    %85 = vector.load %arg2[%84, %c0_69] : memref<24x128xf32, #tpu.memory_space<vmem>>, vector<1x128xf32>
    %86 = arith.addf %82, %85 : vector<1x128xf32>
    %c5_70 = arith.constant 5 : index
    %c2_71 = arith.constant 2 : index
    %87 = memref.load %arg1[%c5_70, %c2_71] : memref<8x4xi32, #tpu.memory_space<smem>>
    %88 = arith.index_cast %87 : i32 to index
    %c0_72 = arith.constant 0 : index
    %89 = vector.load %arg2[%88, %c0_72] : memref<24x128xf32, #tpu.memory_space<vmem>>, vector<1x128xf32>
    %90 = arith.addf %86, %89 : vector<1x128xf32>
    %c5_73 = arith.constant 5 : index
    %c3_74 = arith.constant 3 : index
    %91 = memref.load %arg1[%c5_73, %c3_74] : memref<8x4xi32, #tpu.memory_space<smem>>
    %92 = arith.index_cast %91 : i32 to index
    %c0_75 = arith.constant 0 : index
    %93 = vector.load %arg2[%92, %c0_75] : memref<24x128xf32, #tpu.memory_space<vmem>>, vector<1x128xf32>
    %94 = arith.addf %90, %93 : vector<1x128xf32>
    %c5_76 = arith.constant 5 : index
    %c0_77 = arith.constant 0 : index
    %95 = vector.load %arg6[%c5_76, %c0_77] : memref<8x128xf32, #tpu.memory_space<vmem>>, vector<1x128xf32>
    tpu.vector_store %arg6[%c5_76, %c0_77], %94 {strides = array<i32>} : memref<8x128xf32, #tpu.memory_space<vmem>>, vector<1x128xf32>,
    %c6 = arith.constant 6 : index
    %c0_78 = arith.constant 0 : index
    %96 = memref.load %arg1[%c6, %c0_78] : memref<8x4xi32, #tpu.memory_space<smem>>
    %97 = arith.index_cast %96 : i32 to index
    %c0_79 = arith.constant 0 : index
    %98 = vector.load %arg2[%97, %c0_79] : memref<24x128xf32, #tpu.memory_space<vmem>>, vector<1x128xf32>
    %c6_80 = arith.constant 6 : index
    %c1_81 = arith.constant 1 : index
    %99 = memref.load %arg1[%c6_80, %c1_81] : memref<8x4xi32, #tpu.memory_space<smem>>
    %100 = arith.index_cast %99 : i32 to index
    %c0_82 = arith.constant 0 : index
    %101 = vector.load %arg2[%100, %c0_82] : memref<24x128xf32, #tpu.memory_space<vmem>>, vector<1x128xf32>
    %102 = arith.addf %98, %101 : vector<1x128xf32>
    %c6_83 = arith.constant 6 : index
    %c2_84 = arith.constant 2 : index
    %103 = memref.load %arg1[%c6_83, %c2_84] : memref<8x4xi32, #tpu.memory_space<smem>>
    %104 = arith.index_cast %103 : i32 to index
    %c0_85 = arith.constant 0 : index
    %105 = vector.load %arg2[%104, %c0_85] : memref<24x128xf32, #tpu.memory_space<vmem>>, vector<1x128xf32>
    %106 = arith.addf %102, %105 : vector<1x128xf32>
    %c6_86 = arith.constant 6 : index
    %c3_87 = arith.constant 3 : index
    %107 = memref.load %arg1[%c6_86, %c3_87] : memref<8x4xi32, #tpu.memory_space<smem>>
    %108 = arith.index_cast %107 : i32 to index
    %c0_88 = arith.constant 0 : index
    %109 = vector.load %arg2[%108, %c0_88] : memref<24x128xf32, #tpu.memory_space<vmem>>, vector<1x128xf32>
    %110 = arith.addf %106, %109 : vector<1x128xf32>
    %c6_89 = arith.constant 6 : index
    %c0_90 = arith.constant 0 : index
    %111 = vector.load %arg6[%c6_89, %c0_90] : memref<8x128xf32, #tpu.memory_space<vmem>>, vector<1x128xf32>
    tpu.vector_store %arg6[%c6_89, %c0_90], %110 {strides = array<i32>} : memref<8x128xf32, #tpu.memory_space<vmem>>, vector<1x128xf32>,
    %c7 = arith.constant 7 : index
    %c0_91 = arith.constant 0 : index
    %112 = memref.load %arg1[%c7, %c0_91] : memref<8x4xi32, #tpu.memory_space<smem>>
    %113 = arith.index_cast %112 : i32 to index
    %c0_92 = arith.constant 0 : index
    %114 = vector.load %arg2[%113, %c0_92] : memref<24x128xf32, #tpu.memory_space<vmem>>, vector<1x128xf32>
    %c7_93 = arith.constant 7 : index
    %c1_94 = arith.constant 1 : index
    %115 = memref.load %arg1[%c7_93, %c1_94] : memref<8x4xi32, #tpu.memory_space<smem>>
    %116 = arith.index_cast %115 : i32 to index
    %c0_95 = arith.constant 0 : index
    %117 = vector.load %arg2[%116, %c0_95] : memref<24x128xf32, #tpu.memory_space<vmem>>, vector<1x128xf32>
    %118 = arith.addf %114, %117 : vector<1x128xf32>
    %c7_96 = arith.constant 7 : index
    %c2_97 = arith.constant 2 : index
    %119 = memref.load %arg1[%c7_96, %c2_97] : memref<8x4xi32, #tpu.memory_space<smem>>
    %120 = arith.index_cast %119 : i32 to index
    %c0_98 = arith.constant 0 : index
    %121 = vector.load %arg2[%120, %c0_98] : memref<24x128xf32, #tpu.memory_space<vmem>>, vector<1x128xf32>
    %122 = arith.addf %118, %121 : vector<1x128xf32>
    %c7_99 = arith.constant 7 : index
    %c3_100 = arith.constant 3 : index
    %123 = memref.load %arg1[%c7_99, %c3_100] : memref<8x4xi32, #tpu.memory_space<smem>>
    %124 = arith.index_cast %123 : i32 to index
    %c0_101 = arith.constant 0 : index
    %125 = vector.load %arg2[%124, %c0_101] : memref<24x128xf32, #tpu.memory_space<vmem>>, vector<1x128xf32>
    %126 = arith.addf %122, %125 : vector<1x128xf32>
    %c7_102 = arith.constant 7 : index
    %c0_103 = arith.constant 0 : index
    %127 = vector.load %arg6[%c7_102, %c0_103] : memref<8x128xf32, #tpu.memory_space<vmem>>, vector<1x128xf32>
    tpu.vector_store %arg6[%c7_102, %c0_103], %126 {strides = array<i32>} : memref<8x128xf32, #tpu.memory_space<vmem>>, vector<1x128xf32>,
    %c0_104 = arith.constant 0 : index
    %c0_105 = arith.constant 0 : index
    %128 = vector.load %arg6[%c0_104, %c0_105] : memref<8x128xf32, #tpu.memory_space<vmem>>, vector<8x128xf32>
    %c0_106 = arith.constant 0 : index
    %c0_107 = arith.constant 0 : index
    %129 = vector.load %arg3[%c0_106, %c0_107] : memref<128x128xf32, #tpu.memory_space<vmem>>, vector<128x128xf32>
    %cst = arith.constant dense<0.000000e+00> : vector<8x128xf32>
    %130 = tpu.matmul %128, %129, %cst {dimension_numbers = #tpu.dot_dimension_numbers<[1], [0], [0], [1], [0, 0, 1, 1], [], []>} : vector<8x128xf32>, vector<128x128xf32>, vector<8x128xf32> -> vector<8x128xf32>
    %c0_108 = arith.constant 0 : index
    %c0_109 = arith.constant 0 : index
    %131 = vector.load %arg4[%c0_108, %c0_109] : memref<1x128xf32, #tpu.memory_space<vmem>>, vector<1x128xf32>
    %132 = vector.broadcast %131 : vector<1x128xf32> to vector<8x128xf32>
    %133 = arith.addf %130, %132 : vector<8x128xf32>
    %c0_110 = arith.constant 0 : index
    %c0_111 = arith.constant 0 : index
    %134 = vector.load %arg5[%c0_110, %c0_111] : memref<8x128xf32, #tpu.memory_space<vmem>>, vector<8x128xf32>
    tpu.vector_store %arg5[%c0_110, %c0_111], %133 {strides = array<i32>} : memref<8x128xf32, #tpu.memory_space<vmem>>, vector<8x128xf32>,
    return
  }
  func.func @transform_0(%arg0: i32, %arg1: memref<8x4xi32, #tpu.memory_space<smem>>) -> (i32, i32) {
    %c0_i32 = arith.constant 0 : i32
    %c0_i32_0 = arith.constant 0 : i32
    %c0_i32_1 = arith.constant 0 : i32
    return %c0_i32, %c0_i32_0 : i32, i32
  }
  func.func @transform_1(%arg0: i32, %arg1: memref<8x4xi32, #tpu.memory_space<smem>>) -> (i32, i32) {
    %c0_i32 = arith.constant 0 : i32
    %c0_i32_0 = arith.constant 0 : i32
    return %c0_i32, %arg0 : i32, i32
  }
  func.func @transform_2(%arg0: i32, %arg1: memref<8x4xi32, #tpu.memory_space<smem>>) -> (i32, i32) {
    %c0_i32 = arith.constant 0 : i32
    %c0_i32_0 = arith.constant 0 : i32
    return %c0_i32, %arg0 : i32, i32
  }
  func.func @transform_3(%arg0: i32, %arg1: memref<8x4xi32, #tpu.memory_space<smem>>) -> (i32, i32) {
    %c0_i32 = arith.constant 0 : i32
    %c0_i32_0 = arith.constant 0 : i32
    return %c0_i32, %arg0 : i32, i32
  }
}

</mosaic_0001>

<bundles_post_ra>
// kernel: tpu_custom_call.1
= control target key start
LH: loop header
LB: loop body
LE: loop exit
PB: predicated region body
PF: predicated region fallthrough
CT: control target
= control target key end

     0   :  { %s627_s0 = inlined_call_operand.vmem [shape: s32[8,4], index: 0, kind: input, shape index: {}]   ;;  %s628_s1 = inlined_call_operand.hbm [shape: f32[24,128], index: 1, kind: input, shape index: {}]   ;;  %s629_s2 = inlined_call_operand.hbm [shape: f32[128,128], index: 2, kind: input, shape index: {}]   ;;  %s630_s3 = inlined_call_operand.vmem [shape: f32[1,128], index: 3, kind: input, shape index: {}]   ;;  %s631_s4 = inlined_call_operand.hbm [shape: f32[8,128], index: 4, kind: output, shape index: {}]  }
   0x1   :  { %s9_s17 = sshll.u32 %s627_s0, 4  ;;  %s10_s17 = int_to_ptr.vmem [resolvable:$true] %s9_s17 }
   0x2   :  { %s413_s18 = scalar_lea.vmem %s10_s17, 128  ;;  %p418_p1 = scmp.lt.s32.totalorder %s10_s17, %s10_s17 }
   0x3   :  { %p414_p0 = scmp.ne.s32.totalorder %s10_s17, %s413_s18  ;;  %p419_p2 = scmp.lt.s32.totalorder %s413_s18, %s413_s18 }
   0x5   :  { %p420_p3 = por %p419_p2, %p418_p1 }
   0x7   :  { %p421_p4 = pnand %p420_p3, %p414_p0 }
   0x9   :  { %424 = shalt.err (!%p421_p4)  }
   0xa   :  { %s493_s19 = smov [#allocation4]  }
   0xb   :  { %12 = dma.vmem_to_smem %s10_s17, 128, %s493_s19, [#allocation3] }
   0xc   :  { %485 = dma.done.wait [#allocation3], 128 }
   0xd   :  { %486 = vsyncadd [#allocation3], 4294967168 }
   0xe   :  { %14 = sfence }
   0xf   :  { %15 = vsyncpa [#allocation6], 0 }
  0x10   :  { %16 = vsyncpa [#allocation9], 0 }
  0x11   :  { %17 = vsyncpa [#allocation7], 0  ;;  %s494_s20 = smov [#allocation5]  }
  0x12   :  { %s23_s21 = sshll.u32 %s494_s20, 4  ;;  %s24_s21 = int_to_ptr.vmem [resolvable:$true] %s23_s21 }
  0x13   :  { %s433_s0 = scalar_lea.vmem %s24_s21, 384  ;;  %p438_p6 = scmp.lt.s32.totalorder %s24_s21, %s24_s21 }
  0x14   :  { %p434_p5 = scmp.ne.s32.totalorder %s24_s21, %s433_s0  ;;  %p439_p7 = scmp.lt.s32.totalorder %s433_s0, %s433_s0 }
  0x16   :  { %p440_p8 = por %p439_p7, %p438_p6 }
  0x18   :  { %p441_p9 = pnand %p440_p8, %p434_p5 }
  0x1a   :  { %444 = shalt.err (!%p441_p9)
}
  0x1b   :  { %s495_s22 = smov 128   ;;  %s496_s23 = smov 8  }
  0x1c   :  { %29 = dma.hbm_to_vmem [thread:$0]  %s628_s1, 384, %s24_s21, [#allocation6], %s495_s22, %s495_s22, %s496_s23  }
  0x1d   :  { %s497_s26 = smov [#allocation8]  }
  0x1e   :  { %s35_s27 = sshll.u32 %s497_s26, 4  ;;  %s36_s27 = int_to_ptr.vmem [resolvable:$true] %s35_s27 }
  0x1f   :  { %s453_s28 = scalar_lea.vmem %s36_s27, 2048  ;;  %p458_p11 = scmp.lt.s32.totalorder %s36_s27, %s36_s27 }
  0x20   :  { %p454_p10 = scmp.ne.s32.totalorder %s36_s27, %s453_s28  ;;  %p459_p12 = scmp.lt.s32.totalorder %s453_s28, %s453_s28 }
  0x22   :  { %p460_p13 = por %p459_p12, %p458_p11 }
  0x24   :  { %p461_p0 = pnand %p460_p13, %p454_p10 }
  0x26   :  { %464 = shalt.err (!%p461_p0)
}
  0x27   :  { %41 = dma.hbm_to_vmem [thread:$0]  %s629_s2, 2048, %s36_s27, [#allocation9], %s495_s22, %s495_s22, %s496_s23  }
  0x28   :  { %487 = dma.done.wait [#allocation6], 384  }
  0x29   :  { %488 = vsyncadd [#allocation6], 4294966912 }
  0x2a   :  { %489 = dma.done.wait [#allocation9], 2048  }
  0x2b   :  { %490 = vsyncadd [#allocation9], 4294965248  ;;  %v498_v0 = vmov 0.0   ;;  %vm499_vm0 = vmmov 0   ;;  %s50_s1 = sld [smem:[#allocation4]]  ;;  %v194_v1 = vld [vmem:[#allocation8 + $0x78] sm:$0xff] }
  0x2c   :  { %370 = vmatprep.subr.mxu0 %v498_v0  ;;  %402 = vmatprep.mubr.msk.f32.mxu0 %vm499_vm0, %v498_v0  ;;  %s321_s5 = sld [smem:[#allocation4 + $0x1]]  ;;  %v193_v2 = vld [vmem:[#allocation8 + $0x70] sm:$0xff]  ;;  %v192_v3 = vld [vmem:[#allocation8 + $0x68] sm:$0xff]  ;;  %v191_v4 = vld [vmem:[#allocation8 + $0x60] sm:$0xff] }
  0x2d   :  { %s322_s6 = sld [smem:[#allocation4 + $0x2]]  ;;  %371 = vmatpush3.msra.mxu0 %v194_v1  ;;  %v190_v7 = vld [vmem:[#allocation8 + $0x58] sm:$0xff]  ;;  %v189_v13 = vld [vmem:[#allocation8 + $0x50] sm:$0xff]  ;;  %v188_v19 = vld [vmem:[#allocation8 + $0x48] sm:$0xff] }
  0x2e   :  { %s537_s7 = sld [smem:[#allocation4 + $0x3]]  ;;  %372 = vmatprep.subr.mxu0 %v498_v0  ;;  %v187_v25 = vld [vmem:[#allocation8 + $0x40] sm:$0xff]  ;;  %v186_v28 = vld [vmem:[#allocation8 + $0x38] sm:$0xff]  ;;  %v185_v29 = vld [vmem:[#allocation8 + $0x30] sm:$0xff] }
  0x2f   :  { %s324_s8 = sld [smem:[#allocation4 + $0x80]]  ;;  %373 = vmatpush3.msra.mxu0 %v193_v2  ;;  %v184_v33 = vld [vmem:[#allocation8 + $0x28] sm:$0xff]  ;;  %v183_v37 = vld [vmem:[#allocation8 + $0x20] sm:$0xff]  ;;  %v182_v41 = vld [vmem:[#allocation8 + $0x18] sm:$0xff] }
  0x30   :  { %s539_s9 = sld [smem:[#allocation4 + $0x81]]  ;;  %374 = vmatprep.subr.mxu0 %v498_v0  ;;  %v181_v46 = vld [vmem:[#allocation8 + $0x10] sm:$0xff]  ;;  %v180_v50 = vld [vmem:[#allocation8 + $0x8] sm:$0xff]  ;;  %v179_v55 = vld [vmem:[#allocation8] sm:$0xff] }
  0x31   :  { %s541_s2 = sld [smem:[#allocation4 + $0x82]]  ;;  %375 = vmatpush3.msra.mxu0 %v192_v3  ;;  %s51_s14 = scalar_lea.vmem [#allocation5], %s50_s1 }
  0x32   :  { %s543_s10 = sld [smem:[#allocation4 + $0x83]]  ;;  %v52_v5 = vld [vmem:[%s51_s14] sm:$0x1]  ;;  %s54_s15 = scalar_lea.vmem [#allocation5], %s321_s5  ;;  %376 = vmatprep.subr.mxu0 %v498_v0 }
  0x33   :  { %s546_s11 = sld [smem:[#allocation4 + $0x100]]  ;;  %v55_v6 = vld [vmem:[%s54_s15] sm:$0x1]  ;;  %s58_s16 = scalar_lea.vmem [#allocation5], %s322_s6  ;;  %377 = vmatpush3.msra.mxu0 %v191_v4 }
  0x34   :  { %s548_s12 = sld [smem:[#allocation4 + $0x101]]  ;;  %v56_v8 = vadd.f32 %v55_v6, %v52_v5  ;;  %v59_v9 = vld [vmem:[%s58_s16] sm:$0x1]  ;;  %s62_s18 = scalar_lea.vmem [#allocation5], %s537_s7  ;;  %378 = vmatprep.subr.mxu0 %v498_v0 }
  0x35   :  { %s551_s13 = sld [smem:[#allocation4 + $0x102]]  ;;  %s67_s17 = scalar_lea.vmem [#allocation5], %s324_s8  ;;  %v63_v11 = vld [vmem:[%s62_s18] sm:$0x1]  ;;  %379 = vmatpush3.msra.mxu0 %v190_v7 }
  0x36   :  { %v68_v10 = vld [vmem:[%s67_s17] sm:$0x1]  ;;  %s70_s19 = scalar_lea.vmem [#allocation5], %s539_s9  ;;  %v60_v14 = vadd.f32 %v59_v9, %v56_v8  ;;  %s560_s22 = sld [smem:[#allocation4 + $0x103]]  ;;  %380 = vmatprep.subr.mxu0 %v498_v0 }
  0x37   :  { %v71_v12 = vld [vmem:[%s70_s19] sm:$0x1]  ;;  %s74_s20 = scalar_lea.vmem [#allocation5], %s541_s2  ;;  %s332_s24 = sld [smem:[#allocation4 + $0x180]]  ;;  %381 = vmatpush3.msra.mxu0 %v189_v13 }
  0x38   :  { %v72_v15 = vadd.f32 %v71_v12, %v68_v10  ;;  %v75_v16 = vld [vmem:[%s74_s20] sm:$0x1]  ;;  %s78_s21 = scalar_lea.vmem [#allocation5], %s543_s10  ;;  %v64_v20 = vadd.f32 %v63_v11, %v60_v14  ;;  %s333_s26 = sld [smem:[#allocation4 + $0x181]]  ;;  %382 = vmatprep.subr.mxu0 %v498_v0 }
  0x39   :  { %v79_v17 = vld [vmem:[%s78_s21] sm:$0x1]  ;;  %s83_s0 = scalar_lea.vmem [#allocation5], %s546_s11  ;;  %s566_s27 = sld [smem:[#allocation4 + $0x182]]  ;;  %383 = vmatpush3.msra.mxu0 %v188_v19 }
  0x3a   :  { %v84_v18 = vld [vmem:[%s83_s0] sm:$0x1]  ;;  %v76_v21 = vadd.f32 %v75_v16, %v72_v15  ;;  %s86_s23 = scalar_lea.vmem [#allocation5], %s548_s12  ;;  %65 = vst [vmem:[#allocation2] sm:$0x1] %v64_v20  ;;  %s568_s28 = sld [smem:[#allocation4 + $0x183]]  ;;  %384 = vmatprep.subr.mxu0 %v498_v0 }
  0x3b   :  { %v87_v22 = vld [vmem:[%s86_s23] sm:$0x1]  ;;  %s90_s25 = scalar_lea.vmem [#allocation5], %s551_s13  ;;  %s571_s29 = sld [smem:[#allocation4 + $0x200]]  ;;  %385 = vmatpush3.msra.mxu0 %v187_v25 }
  0x3c   :  { %v88_v23 = vadd.f32 %v87_v22, %v84_v18  ;;  %v91_v24 = vld [vmem:[%s90_s25] sm:$0x1]  ;;  %v80_v26 = vadd.f32 %v79_v17, %v76_v21  ;;  %s573_s30 = sld [smem:[#allocation4 + $0x201]]  ;;  %386 = vmatprep.subr.mxu0 %v498_v0  ;;  %s94_s1 = scalar_lea.vmem [#allocation5], %s560_s22 }
  0x3d   :  { %v95_v30 = vld [vmem:[%s94_s1] sm:$0x1]  ;;  %s577_s5 = sld [smem:[#allocation4 + $0x202]]  ;;  %387 = vmatpush3.msra.mxu0 %v186_v28  ;;  %s99_s6 = scalar_lea.vmem [#allocation5], %s332_s24 }
  0x3e   :  { %v92_v27 = vadd.f32 %v91_v24, %v88_v23  ;;  %81 = vst [vmem:[#allocation2 + $0x1] sm:$0x1] %v80_v26  ;;  %v100_v32 = vld [vmem:[%s99_s6] sm:$0x1]  ;;  %s579_s7 = sld [smem:[#allocation4 + $0x203]]  ;;  %388 = vmatprep.subr.mxu0 %v498_v0  ;;  %s102_s8 = scalar_lea.vmem [#allocation5], %s333_s26 }
  0x3f   :  { %v103_v34 = vld [vmem:[%s102_s8] sm:$0x1]  ;;  %s582_s9 = sld [smem:[#allocation4 + $0x280]]  ;;  %389 = vmatpush3.msra.mxu0 %v185_v29  ;;  %s106_s2 = scalar_lea.vmem [#allocation5], %s566_s27 }
  0x40   :  { %v96_v31 = vadd.f32 %v95_v30, %v92_v27  ;;  %v104_v35 = vadd.f32 %v103_v34, %v100_v32  ;;  %v107_v36 = vld [vmem:[%s106_s2] sm:$0x1]  ;;  %s585_s10 = sld [smem:[#allocation4 + $0x281]]  ;;  %390 = vmatprep.subr.mxu0 %v498_v0  ;;  %s110_s11 = scalar_lea.vmem [#allocation5], %s568_s28 }
  0x41   :  { %v111_v38 = vld [vmem:[%s110_s11] sm:$0x1]  ;;  %s589_s12 = sld [smem:[#allocation4 + $0x282]]  ;;  %391 = vmatpush3.msra.mxu0 %v184_v33  ;;  %s115_s13 = scalar_lea.vmem [#allocation5], %s571_s29 }
  0x42   :  { %97 = vst [vmem:[#allocation2 + $0x2] sm:$0x1] %v96_v31  ;;  %v108_v39 = vadd.f32 %v107_v36, %v104_v35  ;;  %v116_v40 = vld [vmem:[%s115_s13] sm:$0x1]  ;;  %s592_s14 = sld [smem:[#allocation4 + $0x283]]  ;;  %392 = vmatprep.subr.mxu0 %v498_v0  ;;  %s118_s15 = scalar_lea.vmem [#allocation5], %s573_s30 }
  0x43   :  { %v119_v42 = vld [vmem:[%s118_s15] sm:$0x1]  ;;  %s596_s16 = sld [smem:[#allocation4 + $0x300]]  ;;  %393 = vmatpush3.msra.mxu0 %v183_v37  ;;  %s122_s17 = scalar_lea.vmem [#allocation5], %s577_s5 }
  0x44   :  { %v112_v43 = vadd.f32 %v111_v38, %v108_v39  ;;  %v120_v44 = vadd.f32 %v119_v42, %v116_v40  ;;  %v123_v45 = vld [vmem:[%s122_s17] sm:$0x1]  ;;  %s599_s18 = sld [smem:[#allocation4 + $0x301]]  ;;  %394 = vmatprep.subr.mxu0 %v498_v0  ;;  %s126_s19 = scalar_lea.vmem [#allocation5], %s579_s7 }
  0x45   :  { %v127_v47 = vld [vmem:[%s126_s19] sm:$0x1]  ;;  %s603_s20 = sld [smem:[#allocation4 + $0x302]]  ;;  %395 = vmatpush3.msra.mxu0 %v182_v41  ;;  %s131_s21 = scalar_lea.vmem [#allocation5], %s582_s9 }
  0x46   :  { %113 = vst [vmem:[#allocation2 + $0x3] sm:$0x1] %v112_v43  ;;  %v124_v48 = vadd.f32 %v123_v45, %v120_v44  ;;  %v132_v49 = vld [vmem:[%s131_s21] sm:$0x1]  ;;  %s606_s0 = sld [smem:[#allocation4 + $0x303]]  ;;  %396 = vmatprep.subr.mxu0 %v498_v0  ;;  %s134_s22 = scalar_lea.vmem [#allocation5], %s585_s10 }
  0x47   :  { %v135_v51 = vld [vmem:[%s134_s22] sm:$0x1]  ;;  %s610_s23 = sld [smem:[#allocation4 + $0x380]]  ;;  %397 = vmatpush3.msra.mxu0 %v181_v46  ;;  %s138_s24 = scalar_lea.vmem [#allocation5], %s589_s12 }
  0x48   :  { %v128_v52 = vadd.f32 %v127_v47, %v124_v48  ;;  %v136_v53 = vadd.f32 %v135_v51, %v132_v49  ;;  %v139_v54 = vld [vmem:[%s138_s24] sm:$0x1]  ;;  %s349_s25 = sld [smem:[#allocation4 + $0x381]]  ;;  %398 = vmatprep.subr.mxu0 %v498_v0  ;;  %s142_s26 = scalar_lea.vmem [#allocation5], %s592_s14 }
  0x49   :  { %v143_v56 = vld [vmem:[%s142_s26] sm:$0x1]  ;;  %s350_s27 = sld [smem:[#allocation4 + $0x382]]  ;;  %399 = vmatpush3.msra.mxu0 %v180_v50  ;;  %s147_s28 = scalar_lea.vmem [#allocation5], %s596_s16 }
  0x4a   :  { %129 = vst [vmem:[#allocation2 + $0x4] sm:$0x1] %v128_v52  ;;  %v140_v57 = vadd.f32 %v139_v54, %v136_v53  ;;  %v148_v58 = vld [vmem:[%s147_s28] sm:$0x1]  ;;  %s351_s29 = sld [smem:[#allocation4 + $0x383]]  ;;  %400 = vmatprep.subr.mxu0 %v498_v0  ;;  %s150_s30 = scalar_lea.vmem [#allocation5], %s599_s18 }
  0x4b   :  { %v151_v59 = vld [vmem:[%s150_s30] sm:$0x1]  ;;  %401 = vmatpush3.msra.mxu0 %v179_v55  ;;  %s154_s1 = scalar_lea.vmem [#allocation5], %s603_s20  ;;  %s500_s11 = smov [#allocation10]  }
  0x4c   :  { %v144_v60 = vadd.f32 %v143_v56, %v140_v57  ;;  %v152_v61 = vadd.f32 %v151_v59, %v148_v58  ;;  %v155_v62 = vld [vmem:[%s154_s1] sm:$0x1]  ;;  %s158_s5 = scalar_lea.vmem [#allocation5], %s606_s0  ;;  %s279_s12 = sshll.u32 %s500_s11, 4  ;;  %s280_s12 = int_to_ptr.vmem [resolvable:$true] %s279_s12 }
  0x4d   :  { %v159_v63 = vld [vmem:[%s158_s5] sm:$0x1]  ;;  %s163_s6 = scalar_lea.vmem [#allocation5], %s610_s23  ;;  %s465_s13 = scalar_lea.vmem %s280_s12, 128 }
  0x4e   :  { %145 = vst [vmem:[#allocation2 + $0x5] sm:$0x1] %v144_v60  ;;  %v156_v1 = vadd.f32 %v155_v62, %v152_v61  ;;  %v164_v2 = vld [vmem:[%s163_s6] sm:$0x1]  ;;  %s166_s7 = scalar_lea.vmem [#allocation5], %s349_s25  ;;  %p466_p1 = scmp.ne.s32.totalorder %s280_s12, %s465_s13 }
  0x4f   :  { %v167_v3 = vld [vmem:[%s166_s7] sm:$0x1]  ;;  %s170_s8 = scalar_lea.vmem [#allocation5], %s350_s27  ;;  %p470_p2 = scmp.lt.s32.totalorder %s280_s12, %s280_s12 }
  0x50   :  { %v160_v4 = vadd.f32 %v159_v63, %v156_v1  ;;  %v168_v5 = vadd.f32 %v167_v3, %v164_v2  ;;  %v171_v6 = vld [vmem:[%s170_s8] sm:$0x1]  ;;  %s174_s9 = scalar_lea.vmem [#allocation5], %s351_s29  ;;  %p471_p3 = scmp.lt.s32.totalorder %s465_s13, %s465_s13 }
  0x51   :  { %v175_v0 = vld [vmem:[%s174_s9] sm:$0x1] }
  0x52   :  { %161 = vst [vmem:[#allocation2 + $0x6] sm:$0x1] %v160_v4  ;;  %v172_v7 = vadd.f32 %v171_v6, %v168_v5  ;;  %v352_v10 = vld [vmem:[%s630_s3] ss:$0 sm:$0xff]  ;;  %p472_p4 = por %p471_p3, %p470_p2 }
  0x54   :  { %v176_v8 = vadd.f32 %v175_v0, %v172_v7  ;;  %p473_p5 = pnand %p472_p4, %p466_p1 }
  0x56   :  { %177 = vst [vmem:[#allocation2 + $0x7] sm:$0x1] %v176_v8 }
  0x5d   :  { %v178_v9 = vld [vmem:[#allocation2] sm:$0xff] }
  0x5e   :  { %403 = vmatmul.mubr.f32.vlgmr.msra.gmra.mxu0 %v178_v9 }
 0x11e   :  { %v268_v11 = vpop.f32.mrf.mxu0 }
 0x11f   :  { %v269_v12 = vadd.f32 %v352_v10, %v268_v11 }
 0x120   :  { %v404_v13 = vpop.f32.mrf.mxu0 }
 0x121   :  { %272 = vst [vmem:[#allocation10] sm:$0xff] %v269_v12 }
 0x122   :  { %476 = shalt.err (!%p473_p5)
}
 0x123   :  { %282 = dma.vmem_to_hbm [thread:$0]  %s280_s12, 128, %s631_s4, [#allocation7]  }
 0x124   :  { %491 = dma.done.wait [#allocation7], 128  }
 0x125   :  { %492 = vsyncadd [#allocation7], 4294967168 }
 0x126   :  { %286 = vsyncpa [#allocation6], 1 }
 0x127   :  { %287 = vsyncpa [#allocation9], 1 }
 0x128   :  { %288 = vsyncpa [#allocation7], 1 }

</bundles_post_ra>
